<compile_context>
chip_gen: v7x
topology: tpu7x:2x2x1
jax: 0.10.0
libtpu: 0.0.40
codegen_flags: <defaults>
</compile_context>

<pallas_src>
import math

import jax
import jax.numpy as jnp
from jax.experimental import pallas as pl
from jax.experimental.pallas import tpu as pltpu

HIDDEN = 24
INPUT = 8

ROWS = 2 * HIDDEN           # 48 fused output rows: [z_t ; new r_t]
K_PAD = 128                 # fused contraction dim H + I + 1 = 33, padded lane-dense to 128
B_PAD = 128                 # batch/column axis padded to one full lane register
BIAS_ROW = HIDDEN + INPUT   # row of A that is identically 1 (bias folded into the MXU)


def gru_seq_kernel(w_ref, r0_ref, x_ref, out_ref, a_ref):
    """One time step of the fused GRU recurrence (grid = (groups, time)).

    w_ref:   (2H, K_PAD)    pinned fused weights [[W_z, P_z, b_z, 0], [W_r, P_r, b_r, 0]]
    r0_ref:  (H, B_PAD)     initial state for this group (column layout)
    x_ref:   (I, B_PAD)     this step's input features (column layout)
    out_ref: (2H, B_PAD)    rows [0:H) = z_t, rows [H:2H) = new r_t
    a_ref:   (K_PAD, B_PAD) VMEM scratch holding A = [r ; x ; 1 ; 0]; the r rows persist
                            across time steps, so the state never leaves VMEM.
    """
    t = pl.program_id(1)

    @pl.when(t == 0)
    def _init():
        a_ref[...] = jnp.zeros_like(a_ref)
        a_ref[BIAS_ROW:BIAS_ROW + 1, :] = jnp.ones((1, B_PAD), jnp.float32)
        a_ref[:HIDDEN, :] = r0_ref[...]

    # Stream this step's x into the activation tile (r rows already hold the carried state).
    a_ref[HIDDEN:BIAS_ROW, :] = x_ref[...]

    a = a_ref[...]
    # Single MXU push covers W_z@r + P_z@x + b_z (rows 0:H) and W_r@r + P_r@x + b_r (rows H:2H).
    pre = jnp.dot(w_ref[...], a, preferred_element_type=jnp.float32)      # (2H, B_PAD)
    gates = jax.nn.sigmoid(pre)
    z = gates[:HIDDEN, :]               # update gate
    h = gates[HIDDEN:, :]               # candidate (module uses sigmoid, not tanh)
    r_old = a[:HIDDEN, :]
    r_new = (1.0 - z) * r_old + z * h

    a_ref[:HIDDEN, :] = r_new                               # carry state to next time step
    out_ref[...] = jnp.concatenate([z, r_new], axis=0)      # one lane-dense full-tile store


def pack_fused_weights(params):
    """Build the fused (2H, K_PAD) weight tile ONCE at parameter time (not per step)."""
    H, I = HIDDEN, INPUT
    w = jnp.zeros((ROWS, K_PAD), jnp.float32)
    w = w.at[:H, :H].set(params["w_z"].astype(jnp.float32))
    w = w.at[:H, H:H + I].set(params["p_z"].astype(jnp.float32))
    w = w.at[:H, BIAS_ROW].set(params["b_z"][:, 0].astype(jnp.float32))
    w = w.at[H:, :H].set(params["w_r"].astype(jnp.float32))
    w = w.at[H:, H:H + I].set(params["p_r"].astype(jnp.float32))
    w = w.at[H:, BIAS_ROW].set(params["b_r"][:, 0].astype(jnp.float32))
    return w


@jax.jit
def gru_sequence_forward(w_fused, r0, xs):
    """Run the full GRU recurrence in ONE gridded pallas_call.

    w_fused: (2H, K_PAD)   from pack_fused_weights (built once)
    r0:      (G, H, B)     initial state per group, column layout, fixed shape
    xs:      (G, T, I, B)  input features per group / time step, column layout
    Returns (r_seq, z_seq), each of shape (G, T, H, B).
    """
    G, T, _, B = xs.shape
    xs_p = jnp.zeros((G, T, INPUT, B_PAD), jnp.float32).at[:, :, :, :B].set(xs.astype(jnp.float32))
    r0_p = jnp.zeros((G, HIDDEN, B_PAD), jnp.float32).at[:, :, :B].set(r0.astype(jnp.float32))

    out = pl.pallas_call(
        gru_seq_kernel,
        out_shape=jax.ShapeDtypeStruct((G, T, ROWS, B_PAD), jnp.float32),
        grid_spec=pltpu.PrefetchScalarGridSpec(
            num_scalar_prefetch=0,
            grid=(G, T),
            in_specs=[
                pl.BlockSpec((ROWS, K_PAD), lambda g, t: (0, 0)),              # weights pinned
                pl.BlockSpec((None, HIDDEN, B_PAD), lambda g, t: (g, 0, 0)),   # r0 per group
                pl.BlockSpec((None, None, INPUT, B_PAD), lambda g, t: (g, t, 0, 0)),  # x streamed
            ],
            out_specs=pl.BlockSpec((None, None, ROWS, B_PAD), lambda g, t: (g, t, 0, 0)),
            scratch_shapes=[pltpu.VMEM((K_PAD, B_PAD), jnp.float32)],          # resident A = [r;x;1]
        ),
        compiler_params=pltpu.CompilerParams(
            dimension_semantics=("parallel", "arbitrary")),   # groups across cores, time sequential
    )(w_fused, r0_p, xs_p)

    z_seq = out[:, :, :HIDDEN, :B]     # (G, T, H, B)
    r_seq = out[:, :, HIDDEN:, :B]     # (G, T, H, B)
    return r_seq, z_seq


def gru_reference(params, r0, xs):
    """Pure-JAX reference: customGRUCell.forward applied T times per group (column layout)."""
    def step(r, x):
        z = jax.nn.sigmoid(params["w_z"] @ r + params["p_z"] @ x + params["b_z"])
        h = jax.nn.sigmoid(params["w_r"] @ r + params["p_r"] @ x + params["b_r"])
        r_new = (1.0 - z) * r + z * h
        return r_new, (r_new, z)

    def one_group(r0_g, xs_g):
        _, (r_seq, z_seq) = jax.lax.scan(step, r0_g, xs_g)
        return r_seq, z_seq

    return jax.vmap(one_group)(r0, xs)   # each (G, T, H, B)


def init_params(key):
    bound = 1.0 / math.sqrt(HIDDEN)   # nn.init.uniform_(-1/sqrt(hidden), 1/sqrt(hidden))
    ks = jax.random.split(key, 6)
    u = lambda k, shape: jax.random.uniform(k, shape, jnp.float32, -bound, bound)
    return {
        "w_r": u(ks[0], (HIDDEN, HIDDEN)),
        "p_r": u(ks[1], (HIDDEN, INPUT)),
        "b_r": u(ks[2], (HIDDEN, 1)),
        "w_z": u(ks[3], (HIDDEN, HIDDEN)),
        "p_z": u(ks[4], (HIDDEN, INPUT)),
        "b_z": u(ks[5], (HIDDEN, 1)),
    }


if __name__ == "__main__":
    key = jax.random.PRNGKey(0)
    pkey, xkey = jax.random.split(key)

    params = init_params(pkey)
    w_fused = pack_fused_weights(params)   # fused weight built once, reused every step

    GROUPS, SEQ, BATCH = 2, 8, 2           # 2 independent model instances, 8 time steps, batch 2
    # forward implies x is (input_size, B): torch.matmul(self.p_z, x) with p_z (H, input_size)
    xs = jax.random.uniform(xkey, (GROUPS, SEQ, INPUT, BATCH), jnp.float32, -1.0, 1.0)
    # module inits self.r_t to zeros; column layout (H, B) is identical after broadcast
    r0 = jnp.zeros((GROUPS, HIDDEN, BATCH), jnp.float32)

    r_seq, z_seq = gru_sequence_forward(w_fused, r0, xs)
    jax.block_until_ready((r_seq, z_seq))

    r_ref, z_ref = gru_reference(params, r0, xs)

    assert r_seq.shape == (GROUPS, SEQ, HIDDEN, BATCH)
    assert z_seq.shape == (GROUPS, SEQ, HIDDEN, BATCH)
    assert jnp.allclose(r_seq, r_ref, atol=1e-3, rtol=1e-3)
    assert jnp.allclose(z_seq, z_ref, atol=1e-3, rtol=1e-3)

    # Final state in the module's stored layout (B, H), if a caller needs it:
    r_t_final = jnp.transpose(r_seq[:, -1], (0, 2, 1))
    assert r_t_final.shape == (GROUPS, BATCH, HIDDEN)

    print("KERNEL_OK")
</pallas_src>

<mosaic_0001>
module attributes {stable_mosaic.version = 11 : i64} {
  func.func @gru_seq_kernel(%arg0: i32, %arg1: i32, %arg2: memref<48x128xf32, #tpu.memory_space<vmem>>, %arg3: memref<1x24x128xf32, #tpu.memory_space<vmem>>, %arg4: memref<1x1x8x128xf32, #tpu.memory_space<vmem>>, %arg5: memref<1x1x48x128xf32, #tpu.memory_space<vmem>>, %arg6: memref<128x128xf32, #tpu.memory_space<vmem>>) attributes {dimension_semantics = [#tpu.dimension_semantics<parallel>, #tpu.dimension_semantics<arbitrary>], iteration_bounds = array<i64: 2, 8>, scalar_prefetch = 0 : i64, scratch_operands = 1 : i64, tpu.core_type = #tpu.core_type<tc>, window_params = [{pipeline_mode = #tpu.pipeline_mode<synchronous>, transform_indices = @transform_0, window_bounds = array<i64: 48, 128>}, {transform_indices = @transform_1, window_bounds = array<i64: 1, 24, 128>}, {transform_indices = @transform_2, window_bounds = array<i64: 1, 1, 8, 128>}, {transform_indices = @transform_3, window_bounds = array<i64: 1, 1, 48, 128>}]} {
    %c0_i32 = arith.constant 0 : i32
    %0 = arith.cmpi eq, %arg1, %c0_i32 : i32
    %1 = arith.extui %0 : i1 to i32
    %c0_i32_0 = arith.constant 0 : i32
    %2 = arith.cmpi ne, %1, %c0_i32_0 : i32
    scf.if %2 {
      %cst_17 = arith.constant 0.000000e+00 : f32
      %27 = vector.broadcast %cst_17 : f32 to vector<128x128xf32>
      %c0_18 = arith.constant 0 : index
      %c0_19 = arith.constant 0 : index
      %28 = vector.load %arg6[%c0_18, %c0_19] : memref<128x128xf32, #tpu.memory_space<vmem>>, vector<128x128xf32>
      tpu.vector_store %arg6[%c0_18, %c0_19], %27 {strides = array<i32>} : memref<128x128xf32, #tpu.memory_space<vmem>>, vector<128x128xf32>,
      %cst_20 = arith.constant 1.000000e+00 : f32
      %29 = vector.broadcast %cst_20 : f32 to vector<1x128xf32>
      %c32 = arith.constant 32 : index
      %c0_21 = arith.constant 0 : index
      %30 = vector.load %arg6[%c32, %c0_21] : memref<128x128xf32, #tpu.memory_space<vmem>>, vector<1x128xf32>
      tpu.vector_store %arg6[%c32, %c0_21], %29 {strides = array<i32>} : memref<128x128xf32, #tpu.memory_space<vmem>>, vector<1x128xf32>,
      %c0_22 = arith.constant 0 : index
      %c0_23 = arith.constant 0 : index
      %c0_24 = arith.constant 0 : index
      %31 = vector.load %arg3[%c0_22, %c0_23, %c0_24] : memref<1x24x128xf32, #tpu.memory_space<vmem>>, vector<1x24x128xf32>
      %32 = vector.shape_cast %31 : vector<1x24x128xf32> to vector<24x128xf32>
      %c0_25 = arith.constant 0 : index
      %c0_26 = arith.constant 0 : index
      %33 = vector.load %arg6[%c0_25, %c0_26] : memref<128x128xf32, #tpu.memory_space<vmem>>, vector<24x128xf32>
      tpu.vector_store %arg6[%c0_25, %c0_26], %32 {strides = array<i32>} : memref<128x128xf32, #tpu.memory_space<vmem>>, vector<24x128xf32>,
    } else {
    }
    %c0 = arith.constant 0 : index
    %c0_1 = arith.constant 0 : index
    %c0_2 = arith.constant 0 : index
    %c0_3 = arith.constant 0 : index
    %3 = vector.load %arg4[%c0, %c0_1, %c0_2, %c0_3] : memref<1x1x8x128xf32, #tpu.memory_space<vmem>>, vector<1x1x8x128xf32>
    %4 = vector.shape_cast %3 : vector<1x1x8x128xf32> to vector<8x128xf32>
    %c24 = arith.constant 24 : index
    %c0_4 = arith.constant 0 : index
    %5 = vector.load %arg6[%c24, %c0_4] : memref<128x128xf32, #tpu.memory_space<vmem>>, vector<8x128xf32>
    tpu.vector_store %arg6[%c24, %c0_4], %4 {strides = array<i32>} : memref<128x128xf32, #tpu.memory_space<vmem>>, vector<8x128xf32>,
    %c0_5 = arith.constant 0 : index
    %c0_6 = arith.constant 0 : index
    %6 = vector.load %arg6[%c0_5, %c0_6] : memref<128x128xf32, #tpu.memory_space<vmem>>, vector<128x128xf32>
    %c0_7 = arith.constant 0 : index
    %c0_8 = arith.constant 0 : index
    %7 = vector.load %arg2[%c0_7, %c0_8] : memref<48x128xf32, #tpu.memory_space<vmem>>, vector<48x128xf32>
    %cst = arith.constant dense<0.000000e+00> : vector<48x128xf32>
    %8 = tpu.matmul %7, %6, %cst {dimension_numbers = #tpu.dot_dimension_numbers<[1], [0], [0], [1], [0, 0, 1, 1], [], []>} : vector<48x128xf32>, vector<128x128xf32>, vector<48x128xf32> -> vector<48x128xf32>
    %9 = arith.negf %8 : vector<48x128xf32>
    %10 = math.exp %9 : vector<48x128xf32>
    %cst_9 = arith.constant 1.000000e+00 : f32
    %11 = vector.broadcast %cst_9 : f32 to vector<48x128xf32>
    %12 = arith.addf %11, %10 : vector<48x128xf32>
    %13 = arith.divf %11, %12 : vector<48x128xf32>
    %14 = vector.extract_strided_slice %13 {offsets = [0, 0], sizes = [24, 128], strides = [1, 1]} : vector<48x128xf32> to vector<24x128xf32>
    %15 = vector.extract_strided_slice %13 {offsets = [24, 0], sizes = [24, 128], strides = [1, 1]} : vector<48x128xf32> to vector<24x128xf32>
    %16 = vector.extract_strided_slice %6 {offsets = [0, 0], sizes = [24, 128], strides = [1, 1]} : vector<128x128xf32> to vector<24x128xf32>
    %cst_10 = arith.constant 1.000000e+00 : f32
    %17 = vector.broadcast %cst_10 : f32 to vector<24x128xf32>
    %18 = arith.subf %17, %14 : vector<24x128xf32>
    %19 = arith.mulf %18, %16 : vector<24x128xf32>
    %20 = arith.mulf %14, %15 : vector<24x128xf32>
    %21 = arith.addf %19, %20 : vector<24x128xf32>
    %c0_11 = arith.constant 0 : index
    %c0_12 = arith.constant 0 : index
    %22 = vector.load %arg6[%c0_11, %c0_12] : memref<128x128xf32, #tpu.memory_space<vmem>>, vector<24x128xf32>
    tpu.vector_store %arg6[%c0_11, %c0_12], %21 {strides = array<i32>} : memref<128x128xf32, #tpu.memory_space<vmem>>, vector<24x128xf32>,
    %23 = tpu.concatenate %14, %21 in 0 : vector<24x128xf32>, vector<24x128xf32> -> vector<48x128xf32>
    %c0_13 = arith.constant 0 : index
    %c0_14 = arith.constant 0 : index
    %c0_15 = arith.constant 0 : index
    %c0_16 = arith.constant 0 : index
    %24 = vector.load %arg5[%c0_13, %c0_14, %c0_15, %c0_16] : memref<1x1x48x128xf32, #tpu.memory_space<vmem>>, vector<1x1x48x128xf32>
    %25 = vector.shape_cast %24 : vector<1x1x48x128xf32> to vector<48x128xf32>
    %26 = vector.shape_cast %23 : vector<48x128xf32> to vector<1x1x48x128xf32>
    tpu.vector_store %arg5[%c0_13, %c0_14, %c0_15, %c0_16], %26 {strides = array<i32>} : memref<1x1x48x128xf32, #tpu.memory_space<vmem>>, vector<1x1x48x128xf32>,
    return
  }
  func.func @transform_0(%arg0: i32, %arg1: i32) -> (i32, i32) {
    %c0_i32 = arith.constant 0 : i32
    %c0_i32_0 = arith.constant 0 : i32
    %c0_i32_1 = arith.constant 0 : i32
    return %c0_i32, %c0_i32_0 : i32, i32
  }
  func.func @transform_1(%arg0: i32, %arg1: i32) -> (i32, i32, i32) {
    %c0_i32 = arith.constant 0 : i32
    %c0_i32_0 = arith.constant 0 : i32
    %c0_i32_1 = arith.constant 0 : i32
    return %arg0, %c0_i32, %c0_i32_0 : i32, i32, i32
  }
  func.func @transform_2(%arg0: i32, %arg1: i32) -> (i32, i32, i32, i32) {
    %c0_i32 = arith.constant 0 : i32
    %c0_i32_0 = arith.constant 0 : i32
    %c0_i32_1 = arith.constant 0 : i32
    return %arg0, %arg1, %c0_i32, %c0_i32_0 : i32, i32, i32, i32
  }
  func.func @transform_3(%arg0: i32, %arg1: i32) -> (i32, i32, i32, i32) {
    %c0_i32 = arith.constant 0 : i32
    %c0_i32_0 = arith.constant 0 : i32
    %c0_i32_1 = arith.constant 0 : i32
    return %arg0, %arg1, %c0_i32, %c0_i32_0 : i32, i32, i32, i32
  }
}

</mosaic_0001>

<bundles_post_ra>
// kernel: gru_sequence_forward.1
= control target key start
LH: loop header
LB: loop body
LE: loop exit
PB: predicated region body
PF: predicated region fallthrough
CT: control target
= control target key end

     0   :  { %s791_s12 = smov 0   ;;  %s793_s13 = smov 0   ;;  %s891_s0 = inlined_call_operand.vmem [shape: f32[48,128], index: 0, kind: input, shape index: {}]   ;;  %s892_s1 = inlined_call_operand.vmem [shape: f32[2,24,128], index: 1, kind: input, shape index: {}]   ;;  %s893_s2 = inlined_call_operand.vmem [shape: f32[2,8,8,128], index: 2, kind: input, shape index: {}]   ;;  %s894_s3 = inlined_call_operand.vmem [shape: f32[2,8,48,128], index: 3, kind: output, shape index: {}]  }
   0x1   :  { %s795_s14 = smov 0   ;;  %s797_s15 = smov 0  }
   0x2   :  { %s799_s16 = smov 0  }
   0x3 LB: > { %s22_s17 = sadd.s32 1, %s759_s14  ;;  %s25_s18 = sadd.s32 1, %s763_s15  ;;  %s767_s16 = sphi %s799_s16, %s13_s16   ;;  %s763_s15 = sphi %s797_s15, %s898_s15   ;;  %s759_s14 = sphi %s795_s14, %s897_s14   ;;  %s755_s13 = sphi %s793_s13, %s896_s13   ;;  %s751_s12 = sphi %s791_s12, %s895_s12  }
   0x4   : > { %p23_p0 = scmp.ge.s32.totalorder %s22_s17, 8  ;;  %p535_p1 = scmp.ge.s32.totalorder %s767_s16, 1 }
   0x5   : > { %p166_p2 = scmp.lt.s32.totalorder %s767_s16, 17 }
   0x6   : > { %s900_s17 = smov (%p23_p0, %s22_s17), 0  ;;  %s902_s18 = smov (!%p23_p0, %s25_s18), %s763_s15 }
   0x7   : > { %p167_p3 = pnand %p535_p1, %p166_p2  ;;  %p27_p4 = scmp.ge.s32.totalorder %s902_s18, 2 }
   0x8   : > { %p202_p5 = scmp.lt.s32.totalorder (!%p167_p3), %s755_s13, 1  ;;  %p209_p6 = scmp.lt.s32.totalorder (!%p167_p3), %s751_s12, 7 }
   0x9   : > { %s904_s18 = smov (%p27_p4, %s902_s18), 0  ;;  %170 = sbr.rel (%p167_p3) target bundleno = 316 (0x13c), region = 32 }
   0xa   : > { %p540_p7 = scmp.ne.s32.totalorder (!%p167_p3), %s751_s12, 0 }
  0x10   : > { %s906_s13 = smov (!%p202_p5, %s755_s13), 1  ;;  %v769_v3 = vmov (!%p540_p7), 0.0   ;;  %v770_v4 = vmov (!%p540_p7), 1.0  }
  0x11   : > { %s210_s19 = scalar_select %p209_p6, %s751_s12, 7 }
  0x12   : > { %s660_s20 = smul.u32 24, %s906_s13  ;;  %s537_s21 = sshll.u32 %s906_s13, 3  ;;  %232 = vst [vmem:[#allocation2 + $0x20] sm:$0xff] (!%p540_p7), %v769_v3  ;;  %233 = vst [vmem:[#allocation2 + $0x28] sm:$0xff] (!%p540_p7), %v769_v3 }
  0x13   : > { %s212_s22 = sadd.s32 %s537_s21, %s210_s19  ;;  %s661_s23 = smul.u32 6, %s210_s19  ;;  %234 = vst [vmem:[#allocation2 + $0x30] sm:$0xff] (!%p540_p7), %v769_v3  ;;  %235 = vst [vmem:[#allocation2 + $0x38] sm:$0xff] (!%p540_p7), %v769_v3 }
  0x14   : > { %s206_s26 = scalar_lea.vmem %s892_s1, %s660_s20  ;;  %s538_s27 = sshll.u32 %s212_s22, 3  ;;  %236 = vst [vmem:[#allocation2 + $0x40] sm:$0xff] (!%p540_p7), %v769_v3  ;;  %237 = vst [vmem:[#allocation2 + $0x48] sm:$0xff] (!%p540_p7), %v769_v3 }
  0x15   : > { %s831_s30 = scalar_lea.vmem %s893_s2, %s538_s27  ;;  %s662_s4 = smul.u32 48, %s906_s13  ;;  %v245_v0 = vld [vmem:[%s206_s26] sm:$0xff] (!%p540_p7)  ;;  %v246_v1 = vld [vmem:[%s206_s26 + $0x8] sm:$0xff] (!%p540_p7)  ;;  %v247_v2 = vld [vmem:[%s206_s26 + $0x10] sm:$0xff] (!%p540_p7)  ;;  %238 = vst [vmem:[#allocation2 + $0x50] sm:$0xff] (!%p540_p7), %v769_v3 }
  0x16   : > { %227 = sbr.rel (%p540_p7) target bundleno = 29 (0x1d), region = 36  ;;  %239 = vst [vmem:[#allocation2 + $0x58] sm:$0xff] (!%p540_p7), %v769_v3  ;;  %240 = vst [vmem:[#allocation2 + $0x60] sm:$0xff] (!%p540_p7), %v769_v3 }
  0x17   : > { %s221_s5 = sadd.s32 %s662_s4, %s661_s23  ;;  %241 = vst [vmem:[#allocation2 + $0x68] sm:$0xff] (!%p540_p7), %v769_v3  ;;  %242 = vst [vmem:[#allocation2 + $0x70] sm:$0xff] (!%p540_p7), %v769_v3 }
  0x18   : > { %s539_s6 = sshll.u32 %s221_s5, 3  ;;  %243 = vst [vmem:[#allocation2 + $0x78] sm:$0xff] (!%p540_p7), %v769_v3  ;;  %248 = vst [vmem:[#allocation2] sm:$0xff] (!%p540_p7), %v245_v0 }
  0x19   : > { %s836_s9 = scalar_lea.vmem %s894_s3, %s539_s6  ;;  %249 = vst [vmem:[#allocation2 + $0x8] sm:$0xff] (!%p540_p7), %v246_v1  ;;  %250 = vst [vmem:[#allocation2 + $0x10] sm:$0xff] (!%p540_p7), %v247_v2 }
  0x1a   : > { %244 = vst [vmem:[#allocation2 + $0x20] sm:$0x1] (!%p540_p7), %v770_v4 }
  0x1d PF: > { %v251_v7 = vld [vmem:[%s831_s30] sm:$0xff]  ;;  %v258_v12 = vld [vmem:[#allocation2 + $0x28] sm:$0xff]  ;;  %v271_v15 = vld [vmem:[%s891_s0 + $0x10] sm:$0xff] }
  0x1e   : > { %v269_v14 = vld [vmem:[%s891_s0] sm:$0xff]  ;;  %v259_v16 = vld [vmem:[#allocation2 + $0x30] sm:$0xff]  ;;  %v260_v17 = vld [vmem:[#allocation2 + $0x38] sm:$0xff]  ;;  %606 = vmatprep.mubr.f32.mxu1 %v271_v15 }
  0x1f   : > { %v839_v5 = vld [vmem:[#allocation2] sm:$0xff]  ;;  %603 = vmatprep.mubr.f32.mxu0 %v269_v14  ;;  %v624_v18 = vpack.c.bf16 %v260_v17, %v259_v16  ;;  %v262_v20 = vld [vmem:[#allocation2 + $0x48] sm:$0xff]  ;;  %v263_v22 = vld [vmem:[#allocation2 + $0x50] sm:$0xff] }
  0x20   : > { %v841_v6 = vld [vmem:[#allocation2 + $0x8] sm:$0xff]  ;;  %v846_v9 = vld [vmem:[#allocation2 + $0x10] sm:$0xff]  ;;  %v261_v19 = vld [vmem:[#allocation2 + $0x40] sm:$0xff] }
  0x21   : > { %v612_v8 = vpack.c.bf16 %v841_v6, %v839_v5  ;;  %v616_v10 = vpack.c.bf16 %v251_v7, %v846_v9  ;;  %v257_v11 = vld [vmem:[#allocation2 + $0x20] sm:$0xff]  ;;  %v628_v21 = vpack.c.bf16 %v262_v20, %v261_v19  ;;  %v264_v23 = vld [vmem:[#allocation2 + $0x58] sm:$0xff]  ;;  %v266_v26 = vld [vmem:[#allocation2 + $0x68] sm:$0xff] }
  0x22   : > { %v620_v13 = vpack.c.bf16 %v258_v12, %v257_v11  ;;  %v632_v24 = vpack.c.bf16 %v264_v23, %v263_v22  ;;  %v265_v25 = vld [vmem:[#allocation2 + $0x60] sm:$0xff]  ;;  %v267_v28 = vld [vmem:[#allocation2 + $0x70] sm:$0xff]  ;;  %v268_v29 = vld [vmem:[#allocation2 + $0x78] sm:$0xff] }
  0x23   : > { %613 = vmatprep.subr.bf16.mxu0 %v612_v8  ;;  %644 = vmatprep.subr.bf16.mxu1 %v612_v8  ;;  %v636_v27 = vpack.c.bf16 %v266_v26, %v265_v25  ;;  %v640_v30 = vpack.c.bf16 %v268_v29, %v267_v28  ;;  %v270_v31 = vld [vmem:[%s891_s0 + $0x8] sm:$0xff]  ;;  %v272_v32 = vld [vmem:[%s891_s0 + $0x18] sm:$0xff]  ;;  %v273_v33 = vld [vmem:[%s891_s0 + $0x20] sm:$0xff] }
  0x24   : > { %615 = vmatpush3.bf16.msra.mxu0 %v612_v8  ;;  %652 = vmatpush3.bf16.msra.mxu1 %v612_v8  ;;  %v274_v34 = vld [vmem:[%s891_s0 + $0x28] sm:$0xff] }
  0x25   : > { %617 = vmatprep.subr.bf16.mxu0 %v616_v10  ;;  %645 = vmatprep.subr.bf16.mxu1 %v616_v10 }
  0x28   : > { %619 = vmatpush3.bf16.msra.mxu0 %v616_v10  ;;  %653 = vmatpush3.bf16.msra.mxu1 %v616_v10 }
  0x29   : > { %621 = vmatprep.subr.bf16.mxu0 %v620_v13  ;;  %646 = vmatprep.subr.bf16.mxu1 %v620_v13 }
  0x2c   : > { %623 = vmatpush3.bf16.msra.mxu0 %v620_v13  ;;  %654 = vmatpush3.bf16.msra.mxu1 %v620_v13 }
  0x2d   : > { %625 = vmatprep.subr.bf16.mxu0 %v624_v18  ;;  %647 = vmatprep.subr.bf16.mxu1 %v624_v18 }
  0x30   : > { %627 = vmatpush3.bf16.msra.mxu0 %v624_v18  ;;  %655 = vmatpush3.bf16.msra.mxu1 %v624_v18 }
  0x31   : > { %629 = vmatprep.subr.bf16.mxu0 %v628_v21  ;;  %648 = vmatprep.subr.bf16.mxu1 %v628_v21 }
  0x34   : > { %631 = vmatpush3.bf16.msra.mxu0 %v628_v21  ;;  %656 = vmatpush3.bf16.msra.mxu1 %v628_v21 }
  0x35   : > { %633 = vmatprep.subr.bf16.mxu0 %v632_v24  ;;  %649 = vmatprep.subr.bf16.mxu1 %v632_v24 }
  0x38   : > { %635 = vmatpush3.bf16.msra.mxu0 %v632_v24  ;;  %657 = vmatpush3.bf16.msra.mxu1 %v632_v24 }
  0x39   : > { %637 = vmatprep.subr.bf16.mxu0 %v636_v27  ;;  %650 = vmatprep.subr.bf16.mxu1 %v636_v27 }
  0x3c   : > { %639 = vmatpush3.bf16.msra.mxu0 %v636_v27  ;;  %658 = vmatpush3.bf16.msra.mxu1 %v636_v27 }
  0x3d   : > { %641 = vmatprep.subr.bf16.mxu0 %v640_v30  ;;  %651 = vmatprep.subr.bf16.mxu1 %v640_v30 }
  0x40   : > { %643 = vmatpush3.bf16.msra.mxu0 %v640_v30  ;;  %659 = vmatpush3.bf16.msra.mxu1 %v640_v30 }
  0x43   : > { %604 = vmatmul.mubr.f32.vlgmr.msra.gmra.mrb[0].mxu0 %v270_v31  ;;  %607 = vmatmul.mubr.f32.vlgmr.msra.gmra.mrb[0].mxu1 %v272_v32 }
  0x44   : > { %609 = vmatprep.mubr.f32.mxu1 %v273_v33 }
  0x47   : > { %610 = vmatmul.mubr.f32.gmra.mrb[2].mxu1 %v274_v34 }
 0x116   : > { %v605_v35 = vpop.f32.mrb[0].mxu0  ;;  %v608_v36 = vpop.f32.mrb[0].mxu1 }
 0x117   : > { %v542_v37 = vmul.f32 -1.442695, %v605_v35  ;;  %v544_v38 = vmul.f32 -1.442695, %v608_v36  ;;  %v341_v39 = vpop.f32.mrb[1].mxu0  ;;  %v351_v40 = vpop.f32.mrb[1].mxu1 }
 0x118   : > { %v541_v41 = vmul.f32 -1.442695, %v341_v39  ;;  %v543_v42 = vmul.f32 -1.442695, %v351_v40 }
 0x119   : > { %705 = vpow2.f32 %v542_v37 }
 0x11a   : > { %707 = vpow2.f32 %v544_v38  ;;  %v611_v43 = vpop.f32.mrb[2].mxu1 }
 0x11b   : > { %709 = vpow2.f32 %v541_v41  ;;  %v546_v44 = vmul.f32 -1.442695, %v611_v43  ;;  %v361_v45 = vpop.f32.mrb[3].mxu1 }
 0x11c   : > { %711 = vpow2.f32 %v543_v42  ;;  %v545_v46 = vmul.f32 -1.442695, %v361_v45 }
 0x11d   : > { %713 = vpow2.f32 %v546_v44 }
 0x11e   : > { %715 = vpow2.f32 %v545_v46 }
 0x123   : > { %v706_v47 = vpop.eup %705 }
 0x124   : > { %v708_v48 = vpop.eup %707  ;;  %v389_v49 = vadd.f32 1.0, %v706_v47 }
 0x125   : > { %v710_v50 = vpop.eup %709  ;;  %v391_v51 = vadd.f32 1.0, %v708_v48 }
 0x126   : > { %v712_v52 = vpop.eup %711  ;;  %717 = vrcp.f32 %v389_v49  ;;  %v388_v53 = vadd.f32 1.0, %v710_v50 }
 0x127   : > { %v714_v54 = vpop.eup %713  ;;  %719 = vrcp.f32 %v391_v51  ;;  %v390_v55 = vadd.f32 1.0, %v712_v52 }
 0x128   : > { %v716_v56 = vpop.eup %715  ;;  %721 = vrcp.f32 %v388_v53  ;;  %v393_v57 = vadd.f32 1.0, %v714_v54 }
 0x129   : > { %723 = vrcp.f32 %v390_v55  ;;  %v392_v58 = vadd.f32 1.0, %v716_v56 }
 0x12a   : > { %725 = vrcp.f32 %v393_v57 }
 0x12b   : > { %727 = vrcp.f32 %v392_v58 }
 0x130   : > { %v718_v59 = vpop.eup %717 }
 0x131   : > { %v720_v60 = vpop.eup %719  ;;  %422 = vst [vmem:[%s836_s9 + $0x8] sm:$0xff] %v718_v59  ;;  %v407_v61 = vsub.f32 1.0, %v718_v59 }
 0x132   : > { %v722_v62 = vpop.eup %721 }
 0x133   : > { %v724_v63 = vpop.eup %723  ;;  %v406_v0 = vsub.f32 1.0, %v722_v62  ;;  %v412_v1 = vmul.f32 %v722_v62, %v720_v60  ;;  %421 = vst [vmem:[%s836_s9] sm:$0xff] %v722_v62  ;;  %v410_v4 = vmul.f32 %v407_v61, %v841_v6 }
 0x134   : > { %v726_v2 = vpop.eup %725  ;;  %423 = vst [vmem:[%s836_s9 + $0x10] sm:$0xff] %v724_v63  ;;  %v408_v3 = vsub.f32 1.0, %v724_v63 }
 0x135   : > { %v728_v7 = vpop.eup %727  ;;  %v409_v8 = vmul.f32 %v406_v0, %v839_v5  ;;  %v414_v10 = vmul.f32 %v726_v2, %v724_v63 }
 0x136   : > { %v411_v11 = vmul.f32 %v408_v3, %v846_v9  ;;  %v413_v12 = vmul.f32 %v728_v7, %v718_v59 }
 0x137   : > { %v415_v13 = vadd.f32 %v412_v1, %v409_v8 }
 0x138   : > { %v417_v14 = vadd.f32 %v414_v10, %v411_v11  ;;  %v416_v15 = vadd.f32 %v413_v12, %v410_v4 }
 0x139   : > { %418 = vst [vmem:[#allocation2] sm:$0xff] %v415_v13  ;;  %424 = vst [vmem:[%s836_s9 + $0x18] sm:$0xff] %v415_v13 }
 0x13a   : > { %420 = vst [vmem:[#allocation2 + $0x10] sm:$0xff] %v417_v14  ;;  %426 = vst [vmem:[%s836_s9 + $0x28] sm:$0xff] %v417_v14 }
 0x13b   : > { %419 = vst [vmem:[#allocation2 + $0x8] sm:$0xff] %v416_v15  ;;  %425 = vst [vmem:[%s836_s9 + $0x20] sm:$0xff] %v416_v15 }
 0x13c PF: > { %s13_s16 = sadd.s32 1, %s767_s16   ;;  %s895_s12 = smov %s759_s14 }
 0x13d   : > { %p10_p8 = scmp.ge.s32.totalorder %s13_s16, 18   ;;  %s896_s13 = smov %s763_s15 }
 0x13e   : > { %s897_s14 = smov %s900_s17  ;;  %s898_s15 = smov %s904_s18 }
 0x13f   :  { %12 = sbr.rel (!%p10_p8) target bundleno = 3 (0x3), region = 69 }

</bundles_post_ra>
